<compile_context>
chip_gen: v7x
topology: tpu7x:2x2x1
jax: 0.10.0
libtpu: 0.0.40
codegen_flags: <defaults>
</compile_context>

<pallas_src>
import jax
import jax.numpy as jnp
from jax.experimental import pallas as pl
from jax.experimental.pallas import tpu as pltpu

BN_EPS = 1e-5
LANE = 128


def mlp_kernel(x_ref, w1_ref, b1_ref, w2_ref, b2_ref, w3_ref, b3_ref, o_ref):
    # ---- layer 1: Linear (BN folded into W1/b1 in the wrapper) + Tanh ----
    h = jnp.tanh(
        jnp.dot(x_ref[...], w1_ref[...], preferred_element_type=jnp.float32)
        + b1_ref[...])
    # ---- layer 2: Linear (BN folded) + Tanh; Dropout(0.5) is identity in eval ----
    h = jnp.tanh(
        jnp.dot(h, w2_ref[...], preferred_element_type=jnp.float32)
        + b2_ref[...])
    # TODO(synk): training-mode Dropout(0.5) mask / batch-statistics BN not implemented (eval semantics).
    # ---- output layer: Linear (output features zero-padded to lane width) ----
    o_ref[...] = (
        jnp.dot(h, w3_ref[...], preferred_element_type=jnp.float32)
        + b3_ref[...]).astype(o_ref.dtype)


def _fold_bn(w, b, gamma, beta, mean, var):
    """Fold eval-mode BatchNorm1d into the preceding Linear."""
    scale = gamma * jax.lax.rsqrt(var + BN_EPS)          # (1, F)
    return w * scale, (b - mean) * scale + beta


def _resident_spec(arr):
    """Whole array in VMEM, same block for every grid step (stays resident)."""
    return pl.BlockSpec(arr.shape, lambda i: (0,) * arr.ndim)


def mlp_forward(x, params, *, tile_b=8):
    (w1, b1, g1, be1, m1, v1,
     w2, b2, g2, be2, m2, v2,
     w3, b3) = params

    # Fold BatchNorm (running-stat / eval semantics) into the Linear layers.
    w1f, b1f = _fold_bn(w1, b1, g1, be1, m1, v1)
    w2f, b2f = _fold_bn(w2, b2, g2, be2, m2, v2)

    # Pad output features to a multiple of 128 so output stores are lane-dense.
    out_features = w3.shape[1]
    n_pad = -out_features % LANE
    w3p = jnp.pad(w3, ((0, 0), (0, n_pad)))
    b3p = jnp.pad(b3, ((0, 0), (0, n_pad)))
    padded_out = out_features + n_pad

    # Pad batch to a multiple of the (sublane-aligned) batch tile.
    B = x.shape[0]
    b_pad = -B % tile_b
    xp = jnp.pad(x, ((0, b_pad), (0, 0)))
    Bp = B + b_pad
    nb = Bp // tile_b

    in_f = x.shape[1]
    h1 = w1.shape[1]
    h2 = w2.shape[1]

    flops = 2 * Bp * (in_f * h1 + h1 * h2 + h2 * padded_out)
    transcendentals = Bp * (h1 + h2)
    bytes_accessed = 4 * (Bp * in_f + Bp * padded_out
                          + in_f * h1 + h1
                          + h1 * h2 + h2
                          + h2 * padded_out + padded_out)

    out = pl.pallas_call(
        mlp_kernel,
        out_shape=jax.ShapeDtypeStruct((Bp, padded_out), jnp.float32),
        grid=(nb,),
        in_specs=[
            pl.BlockSpec((tile_b, in_f), lambda i: (i, 0)),   # x: tiled over batch
            _resident_spec(w1f), _resident_spec(b1f),
            _resident_spec(w2f), _resident_spec(b2f),
            _resident_spec(w3p), _resident_spec(b3p),
        ],
        out_specs=pl.BlockSpec((tile_b, padded_out), lambda i: (i, 0)),
        compiler_params=pltpu.CompilerParams(
            dimension_semantics=("parallel",)),
        cost_estimate=pl.CostEstimate(
            flops=flops,
            transcendentals=transcendentals,
            bytes_accessed=bytes_accessed),
    )(xp, w1f, b1f, w2f, b2f, w3p, b3p)

    return out[:B, :out_features]


def init_params(key, input_size, hidden_sizes, output_size):
    """Deterministic synthetic parameters (PyTorch-like shapes, pre-transposed W)."""
    sizes = [input_size] + list(hidden_sizes) + [output_size]
    keys = jax.random.split(key, 3 * len(sizes))
    params = []
    ki = 0
    for li in range(len(sizes) - 1):
        fan_in, fan_out = sizes[li], sizes[li + 1]
        bound = 1.0 / jnp.sqrt(fan_in)
        w = jax.random.uniform(keys[ki], (fan_in, fan_out), jnp.float32, -bound, bound); ki += 1
        b = jax.random.uniform(keys[ki], (1, fan_out), jnp.float32, -bound, bound); ki += 1
        params.extend([w, b])
        if li < len(sizes) - 2:  # hidden layers carry BatchNorm1d params
            gamma = 1.0 + 0.1 * jax.random.normal(keys[ki], (1, fan_out), jnp.float32); ki += 1
            beta = 0.1 * jnp.arange(fan_out, dtype=jnp.float32).reshape(1, fan_out) / fan_out
            running_mean = 0.05 * jnp.arange(fan_out, dtype=jnp.float32).reshape(1, fan_out) / fan_out
            running_var = jnp.ones((1, fan_out), jnp.float32) + 0.01 * jnp.arange(
                fan_out, dtype=jnp.float32).reshape(1, fan_out)
            params.extend([gamma, beta, running_mean, running_var])
    return tuple(params)


def reference_forward(x, params):
    """Unfused eval-mode reference (explicit BN with running stats)."""
    (w1, b1, g1, be1, m1, v1,
     w2, b2, g2, be2, m2, v2,
     w3, b3) = params
    h = x @ w1 + b1
    h = (h - m1) / jnp.sqrt(v1 + BN_EPS) * g1 + be1
    h = jnp.tanh(h)
    h = h @ w2 + b2
    h = (h - m2) / jnp.sqrt(v2 + BN_EPS) * g2 + be2
    h = jnp.tanh(h)
    return h @ w3 + b3


if __name__ == "__main__":
    key = jax.random.PRNGKey(0)
    batch, input_size, hidden_sizes, output_size = 32, 16, (32, 32), 8

    kx, kp = jax.random.split(key)
    x = jax.random.normal(kx, (batch, input_size), jnp.float32)
    params = init_params(kp, input_size, hidden_sizes, output_size)

    out = mlp_forward(x, params)
    jax.block_until_ready(out)

    ref = reference_forward(x, params)
    assert out.shape == (batch, output_size)
    assert jnp.allclose(out, ref, atol=1e-4, rtol=1e-4)

    print("KERNEL_OK")
</pallas_src>

<mosaic_0001>
module attributes {stable_mosaic.version = 11 : i64} {
  func.func @mlp_kernel(%arg0: i32, %arg1: memref<8x16xf32, #tpu.memory_space<vmem>>, %arg2: memref<16x32xf32, #tpu.memory_space<vmem>>, %arg3: memref<1x32xf32, #tpu.memory_space<vmem>>, %arg4: memref<32x32xf32, #tpu.memory_space<vmem>>, %arg5: memref<1x32xf32, #tpu.memory_space<vmem>>, %arg6: memref<32x128xf32, #tpu.memory_space<vmem>>, %arg7: memref<1x128xf32, #tpu.memory_space<vmem>>, %arg8: memref<8x128xf32, #tpu.memory_space<vmem>>) attributes {dimension_semantics = [#tpu.dimension_semantics<parallel>], iteration_bounds = array<i64: 4>, scalar_prefetch = 0 : i64, scratch_operands = 0 : i64, tpu.core_type = #tpu.core_type<tc>, window_params = [{transform_indices = @transform_0, window_bounds = array<i64: 8, 16>}, {pipeline_mode = #tpu.pipeline_mode<synchronous>, transform_indices = @transform_1, window_bounds = array<i64: 16, 32>}, {pipeline_mode = #tpu.pipeline_mode<synchronous>, transform_indices = @transform_2, window_bounds = array<i64: 1, 32>}, {pipeline_mode = #tpu.pipeline_mode<synchronous>, transform_indices = @transform_3, window_bounds = array<i64: 32, 32>}, {pipeline_mode = #tpu.pipeline_mode<synchronous>, transform_indices = @transform_4, window_bounds = array<i64: 1, 32>}, {pipeline_mode = #tpu.pipeline_mode<synchronous>, transform_indices = @transform_5, window_bounds = array<i64: 32, 128>}, {pipeline_mode = #tpu.pipeline_mode<synchronous>, transform_indices = @transform_6, window_bounds = array<i64: 1, 128>}, {transform_indices = @transform_7, window_bounds = array<i64: 8, 128>}]} {
    %c0 = arith.constant 0 : index
    %c0_0 = arith.constant 0 : index
    %0 = vector.load %arg1[%c0, %c0_0] : memref<8x16xf32, #tpu.memory_space<vmem>>, vector<8x16xf32>
    %c0_1 = arith.constant 0 : index
    %c0_2 = arith.constant 0 : index
    %1 = vector.load %arg2[%c0_1, %c0_2] : memref<16x32xf32, #tpu.memory_space<vmem>>, vector<16x32xf32>
    %cst = arith.constant dense<0.000000e+00> : vector<8x32xf32>
    %2 = tpu.matmul %0, %1, %cst {dimension_numbers = #tpu.dot_dimension_numbers<[1], [0], [0], [1], [0, 0, 1, 1], [], []>} : vector<8x16xf32>, vector<16x32xf32>, vector<8x32xf32> -> vector<8x32xf32>
    %c0_3 = arith.constant 0 : index
    %c0_4 = arith.constant 0 : index
    %3 = vector.load %arg3[%c0_3, %c0_4] : memref<1x32xf32, #tpu.memory_space<vmem>>, vector<1x32xf32>
    %4 = vector.broadcast %3 : vector<1x32xf32> to vector<8x32xf32>
    %5 = arith.addf %2, %4 : vector<8x32xf32>
    %6 = math.tanh %5 : vector<8x32xf32>
    %c0_5 = arith.constant 0 : index
    %c0_6 = arith.constant 0 : index
    %7 = vector.load %arg4[%c0_5, %c0_6] : memref<32x32xf32, #tpu.memory_space<vmem>>, vector<32x32xf32>
    %cst_7 = arith.constant dense<0.000000e+00> : vector<8x32xf32>
    %8 = tpu.matmul %6, %7, %cst_7 {dimension_numbers = #tpu.dot_dimension_numbers<[1], [0], [0], [1], [0, 0, 1, 1], [], []>} : vector<8x32xf32>, vector<32x32xf32>, vector<8x32xf32> -> vector<8x32xf32>
    %c0_8 = arith.constant 0 : index
    %c0_9 = arith.constant 0 : index
    %9 = vector.load %arg5[%c0_8, %c0_9] : memref<1x32xf32, #tpu.memory_space<vmem>>, vector<1x32xf32>
    %10 = vector.broadcast %9 : vector<1x32xf32> to vector<8x32xf32>
    %11 = arith.addf %8, %10 : vector<8x32xf32>
    %12 = math.tanh %11 : vector<8x32xf32>
    %c0_10 = arith.constant 0 : index
    %c0_11 = arith.constant 0 : index
    %13 = vector.load %arg6[%c0_10, %c0_11] : memref<32x128xf32, #tpu.memory_space<vmem>>, vector<32x128xf32>
    %cst_12 = arith.constant dense<0.000000e+00> : vector<8x128xf32>
    %14 = tpu.matmul %12, %13, %cst_12 {dimension_numbers = #tpu.dot_dimension_numbers<[1], [0], [0], [1], [0, 0, 1, 1], [], []>} : vector<8x32xf32>, vector<32x128xf32>, vector<8x128xf32> -> vector<8x128xf32>
    %c0_13 = arith.constant 0 : index
    %c0_14 = arith.constant 0 : index
    %15 = vector.load %arg7[%c0_13, %c0_14] : memref<1x128xf32, #tpu.memory_space<vmem>>, vector<1x128xf32>
    %16 = vector.broadcast %15 : vector<1x128xf32> to vector<8x128xf32>
    %17 = arith.addf %14, %16 : vector<8x128xf32>
    %c0_15 = arith.constant 0 : index
    %c0_16 = arith.constant 0 : index
    %18 = vector.load %arg8[%c0_15, %c0_16] : memref<8x128xf32, #tpu.memory_space<vmem>>, vector<8x128xf32>
    tpu.vector_store %arg8[%c0_15, %c0_16], %17 {strides = array<i32>} : memref<8x128xf32, #tpu.memory_space<vmem>>, vector<8x128xf32>,
    return
  }
  func.func @transform_0(%arg0: i32) -> (i32, i32) {
    %c0_i32 = arith.constant 0 : i32
    %c0_i32_0 = arith.constant 0 : i32
    return %arg0, %c0_i32 : i32, i32
  }
  func.func @transform_1(%arg0: i32) -> (i32, i32) {
    %c0_i32 = arith.constant 0 : i32
    %c0_i32_0 = arith.constant 0 : i32
    %c0_i32_1 = arith.constant 0 : i32
    return %c0_i32, %c0_i32_0 : i32, i32
  }
  func.func @transform_2(%arg0: i32) -> (i32, i32) {
    %c0_i32 = arith.constant 0 : i32
    %c0_i32_0 = arith.constant 0 : i32
    %c0_i32_1 = arith.constant 0 : i32
    return %c0_i32, %c0_i32_0 : i32, i32
  }
  func.func @transform_3(%arg0: i32) -> (i32, i32) {
    %c0_i32 = arith.constant 0 : i32
    %c0_i32_0 = arith.constant 0 : i32
    %c0_i32_1 = arith.constant 0 : i32
    return %c0_i32, %c0_i32_0 : i32, i32
  }
  func.func @transform_4(%arg0: i32) -> (i32, i32) {
    %c0_i32 = arith.constant 0 : i32
    %c0_i32_0 = arith.constant 0 : i32
    %c0_i32_1 = arith.constant 0 : i32
    return %c0_i32, %c0_i32_0 : i32, i32
  }
  func.func @transform_5(%arg0: i32) -> (i32, i32) {
    %c0_i32 = arith.constant 0 : i32
    %c0_i32_0 = arith.constant 0 : i32
    %c0_i32_1 = arith.constant 0 : i32
    return %c0_i32, %c0_i32_0 : i32, i32
  }
  func.func @transform_6(%arg0: i32) -> (i32, i32) {
    %c0_i32 = arith.constant 0 : i32
    %c0_i32_0 = arith.constant 0 : i32
    %c0_i32_1 = arith.constant 0 : i32
    return %c0_i32, %c0_i32_0 : i32, i32
  }
  func.func @transform_7(%arg0: i32) -> (i32, i32) {
    %c0_i32 = arith.constant 0 : i32
    %c0_i32_0 = arith.constant 0 : i32
    return %arg0, %c0_i32 : i32, i32
  }
}

</mosaic_0001>

<bundles_post_ra>
// kernel: tpu_custom_call.1
= control target key start
LH: loop header
LB: loop body
LE: loop exit
PB: predicated region body
PF: predicated region fallthrough
CT: control target
= control target key end

     0   :  { %12 = vsyncpa [#allocation3], 0  ;;  %s1080_s0 = inlined_call_operand.vmem [shape: f32[32,16], index: 0, kind: input, shape index: {}]   ;;  %s1081_s1 = inlined_call_operand.hbm [shape: f32[16,32], index: 1, kind: input, shape index: {}]   ;;  %s1082_s2 = inlined_call_operand.vmem [shape: f32[1,32], index: 2, kind: input, shape index: {}]   ;;  %s1083_s3 = inlined_call_operand.vmem [shape: f32[32,32], index: 3, kind: input, shape index: {}]   ;;  %s1084_s4 = inlined_call_operand.vmem [shape: f32[1,32], index: 4, kind: input, shape index: {}]   ;;  %s1085_s5 = inlined_call_operand.vmem [shape: f32[32,128], index: 5, kind: input, shape index: {}]   ;;  %s1086_s6 = inlined_call_operand.vmem [shape: f32[1,128], index: 6, kind: input, shape index: {}]   ;;  %s1087_s7 = inlined_call_operand.hbm [shape: f32[32,128], index: 7, kind: output, shape index: {}]  }
   0x1   :  { %13 = vsyncpa [#allocation4], 0 }
   0x2   :  { %15 = vsyncpa [#allocation4 + $0x1], 0  ;;  %s907_s24 = smov 0   ;;  %s909_s25 = smov 0  }
   0x3   :  { %s911_s26 = smov 0   ;;  %s913_s27 = smov 0  }
   0x4 LB: > { %s928_s28 = sadd.s32 4294967295, %s858_s27   ;;  %s630_s29 = sadd.s32 4294967294, %s858_s27   ;;  %s858_s27 = sphi %s913_s27, %s1103_s27   ;;  %s854_s26 = sphi %s911_s26, %s1102_s26   ;;  %s850_s25 = sphi %s909_s25, %s1101_s25   ;;  %s846_s24 = sphi %s907_s24, %s1100_s24  }
   0x5   : > { %s932_s30 = sadd.s32 1, %s858_s27   ;;  %s180_s8 = sadd.s32 1, %s854_s26 }
   0x6   : > { %s177_s9 = ssub.s32 %s858_s27, %s932_s30  ;;  %p190_p0 = scmp.ne.s32.totalorder %s854_s26, %s850_s25 }
   0x7   : > { %p178_p1 = scmp.eq.s32.totalorder %s177_s9, 0  ;;  %p191_p2 = scmp.eq.s32.totalorder %s928_s28, 3 }
   0x8   : > { %p196_p3 = scmp.ne.s32.totalorder %s850_s25, %s846_s24  ;;  %p197_p4 = scmp.eq.s32.totalorder %s630_s29, 3 }
   0x9   : > { %s943_s10 = scalar_select %p178_p1, %s854_s26, %s180_s8  }
   0xa   : > { %p945_p5 = por %p191_p2, %p190_p0  ;;  %p949_p6 = por %p197_p4, %p196_p3 }
   0xb   : > { %p631_p7 = scmp.ge.s32.totalorder %s858_s27, 1  ;;  %p204_p8 = scmp.lt.s32.totalorder %s858_s27, 5 }
   0xc   : > { %s1091_s11 = scalar_select %p945_p5, 1, 0 }
   0xd   : > { %s1092_s12 = scalar_select %p949_p6, 1, 0 }
   0xe   : > { %p1088_p9 = scmp.eq.s32.totalorder %s928_s28, 0  ;;  %p956_p10 = pnand %p631_p7, %p204_p8 }
   0xf   : > { %s860_s14 = smov [#allocation2]   ;;  %s764_s19 = scalar_lea.hbm %s1081_s1, 256 }
  0x10   : > { %s1093_s13 = scalar_select %p956_p10, 1, 0 }
  0x11   : > { %s216_s15 = sshll.u32 %s860_s14, 4  ;;  %p711_p11 = pneg %p956_p10  ;;  %s217_s15 = int_to_ptr.vmem [resolvable:$true] %s216_s15 }
  0x12   : > { %p765_p13 = scmp.ne.s32.totalorder %s1081_s1, %s764_s19  ;;  %p771_p3 = scmp.lt.u32.totalorder %s764_s19, %s1081_s1 }
  0x13   : > { %p964_p12 = pnand %p1088_p9, %p711_p11 }
  0x15   : > { %p766_p0 = pneg %p964_p12 }
  0x17   : > { %p767_p1 = pnand %p766_p0, %p765_p13 }
  0x19   : > { %p768_p2 = pneg %p767_p1 }
  0x1b   : > { %p773_p4 = pnand %p771_p3, %p768_p2 }
  0x1d   : > { %776 = shalt.err (!%p773_p4)
}
  0x1e   : > { %s777_s29 = scalar_lea.vmem %s217_s15, 256  ;;  %p785_p9 = scmp.lt.s32.totalorder %s217_s15, %s217_s15 }
  0x1f   : > { %p778_p7 = scmp.ne.s32.totalorder %s217_s15, %s777_s29  ;;  %p786_p6 = scmp.lt.s32.totalorder %s777_s29, %s777_s29 }
  0x21   : > { %p780_p8 = pnand %p778_p7, %p766_p0  ;;  %p787_p5 = por %p786_p6, %p785_p9 }
  0x23   : > { %p781_p11 = pneg %p780_p8 }
  0x25   : > { %p788_p10 = pnand %p787_p5, %p781_p11 }
  0x27   : > { %791 = shalt.err (!%p788_p10)
}
  0x28   : > { %s861_s8 = smov 128   ;;  %s862_s9 = smov 8  }
  0x29   : > { %714 = dma.hbm_to_vmem [thread:$0]  (!%p964_p12), %s1081_s1, 256, %s217_s15, [#allocation3], %s861_s8, %s861_s8, %s862_s9  }
  0x2a   : > { %p1095_p13 = scmp.ne.s32.totalorder %s1093_s13, 0 }
  0x2b   : > { %p1096_p1 = scmp.eq.s32.totalorder (!%p1095_p13), %s928_s28, 0 }
  0x2c   : > { %254 = sbr.rel (%p1095_p13) target bundleno = 737 (0x2e1), region = 48 }
  0x33   : > { %837 = dma.done.wait (%p1096_p1), [#allocation3], 256   ;;  %p1097_p0 = pmov %p1096_p1 }
  0x34   : > { %p285_p5 = scmp.lt.s32.totalorder %s928_s28, 3  ;;  %v863_v0 = vmov 0.0|0.0   ;;  %vm864_vm0 = vmmov 0   ;;  %v865_v1 = vmov 0.0   ;;  %v290_v2 = vld [vmem:[#allocation2] sm:$0xff]  ;;  %v291_v3 = vld [vmem:[#allocation2 + $0x8] sm:$0xff] }
  0x35   : > { %839 = vsyncadd (%p1097_p0), [#allocation3], 4294967040  ;;  %690 = vmatprep.subr.bf16.mxu0 %v863_v0  ;;  %665 = vmatprep.mubr.msk.f32.mxu0 %vm864_vm0, %v865_v1  ;;  %v691_v4 = vpack.c.bf16 %v291_v3, %v290_v2  ;;  %vm299_vm1 = vcmask 130048   ;;  %v374_v6 = vld [vmem:[%s1083_s3] sm:$0xff]  ;;  %v375_v7 = vld [vmem:[%s1083_s3 + $0x8] sm:$0xff]  ;;  %vm385_vm2 = vcmask 261120  }
  0x36   : > { %s286_s16 = scalar_select %p285_p5, %s928_s28, 3  ;;  %693 = vmatprep.subr.bf16.mxu1 %v863_v0  ;;  %676 = vmatprep.mubr.msk.f32.mxu1 %vm864_vm0, %v865_v1  ;;  %v376_v8 = vld [vmem:[%s1083_s3 + $0x10] sm:$0xff]  ;;  %v694_v9 = vpack.c.bf16 %v375_v7, %v374_v6  ;;  %v377_v10 = vld [vmem:[%s1083_s3 + $0x18] sm:$0xff]  ;;  %v638_v12 = vld [vmem:[%s1082_s2] ss:$0 sm:$0xff] }
  0x37   : > { %692 = vmatpush3.bf16.msra.mxu0 %v691_v4  ;;  %v697_v11 = vpack.c.bf16 %v377_v10, %v376_v8  ;;  %v460_v17 = vld [vmem:[%s1085_s5] sm:$0xff]  ;;  %v461_v18 = vld [vmem:[%s1085_s5 + $0x8] sm:$0xff]  ;;  %v462_v19 = vld [vmem:[%s1085_s5 + $0x10] sm:$0xff]  ;;  %s282_s9 = sand.u32 1, %s850_s25   ;;  %p1098_p9 = scmp.ne.s32.totalorder %s1091_s11, 0 }
  0x38   : > { %s637_s13 = sshll.u32 %s286_s16, 3  ;;  %699 = vmatprep.subr.bf16.mxu0 %v863_v0  ;;  %695 = vmatpush3.bf16.msra.mxu1 %v694_v9  ;;  %v700_v20 = vpack.c.bf16 %v461_v18, %v460_v17  ;;  %v463_v21 = vld [vmem:[%s1085_s5 + $0x18] sm:$0xff]  ;;  %v640_v23 = vld [vmem:[%s1084_s4] ss:$0 sm:$0xff]  ;;  %s636_s14 = sshll.u32 %s282_s9, 3 }
  0x39   : > { %s288_s19 = scalar_lea.vmem %s1080_s0, %s637_s13  ;;  %696 = vmatprep.subr.bf16.mxu1 %v863_v0  ;;  %v703_v22 = vpack.c.bf16 %v463_v21, %v462_v19  ;;  %v642_v28 = vld [vmem:[%s1086_s6] ss:$0 sm:$0xff]  ;;  %s645_s13 = sshll.u32 %s928_s28, 7 }
  0x3a   : > { %v289_v5 = vld [vmem:[%s288_s19] sm:$0xff]  ;;  %s284_s15 = scalar_lea.vmem [#allocation5], %s636_s14  ;;  %s1038_s21 = scalar_lea.hbm %s1087_s7, %s645_s13 }
  0x3b   : > { %666 = vmatmul.mubr.msk.f32.vlgmr.msra.gmra.mrb[0].mxu0 %vm299_vm1, %v289_v5  ;;  %s559_s18 = sshll.u32 %s284_s15, 4  ;;  %s546_s22 = scalar_lea.sflag [#allocation4], %s282_s9  ;;  %s1040_s18 = int_to_ptr.vmem [resolvable:$true] %s559_s18 }
  0x3c   : > { %687 = vmatprep.mubr.msk.f32.mxu0 %vm864_vm0, %v865_v1  ;;  %698 = vmatpush3.bf16.msra.mxu1 %v697_v11  ;;  %s792_s23 = scalar_lea.vmem %s1040_s18, 128  ;;  %s866_s28 = smov [#allocation5]  }
  0x3d   : > { %701 = vmatpush3.bf16.msra.mxu0 %v700_v20  ;;  %p793_p6 = scmp.ne.s32.totalorder %s1040_s18, %s792_s23  ;;  %s796_s29 = sshll.u32 %s866_s28, 4  ;;  %s797_s29 = int_to_ptr.vmem [resolvable:$false] %s796_s29 }
  0x3e   : > { %702 = vmatprep.subr.bf16.mxu0 %v863_v0  ;;  %s798_s8 = scalar_lea.vmem %s797_s29, 256  ;;  %p799_p2 = scmp.lt.s32.totalorder %s1040_s18, %s797_s29 }
  0x3f   : > { %p794_p10 = pnand %p793_p6, %p1098_p9  ;;  %p800_p3 = scmp.lt.s32.totalorder %s798_s8, %s792_s23 }
  0x41   : > { %704 = vmatpush3.bf16.msra.mxu0 %v703_v22  ;;  %p795_p12 = pneg %p794_p10  ;;  %p801_p4 = por %p800_p3, %p799_p2 }
  0x43   : > { %p802_p7 = pnand %p801_p4, %p795_p12 }
 0x10e   : > { %v369_v13 = vpop.f32.mrb[0].mxu0 }
 0x10f   : > { %v370_v14 = vadd.f32 %v638_v12, %v369_v13  ;;  %v667_v15 = vpop.f32.mrb[1].mxu0 }
 0x111   : > { %760 = vtanh.f32 %v370_v14 }
 0x11b   : > { %v761_v16 = vpop.eup %760 }
 0x11c   : > { %677 = vmatmul.mubr.msk.f32.vlgmr.msra.gmra.mrb[0].mxu1 %vm385_vm2, %v761_v16 }
 0x1ef   : > { %v455_v24 = vpop.f32.mrb[0].mxu1 }
 0x1f0   : > { %v456_v25 = vadd.f32 %v640_v23, %v455_v24  ;;  %v678_v26 = vpop.f32.mrb[1].mxu1 }
 0x1f2   : > { %762 = vtanh.f32 %v456_v25 }
 0x1fc   : > { %v763_v27 = vpop.eup %762 }
 0x1fd   : > { %688 = vmatmul.mubr.msk.f32.vlgmr.msra.gmra.mrb[2].mxu0 %vm385_vm2, %v763_v27 }
 0x2d0   : > { %v540_v29 = vpop.f32.mrb[2].mxu0 }
 0x2d1   : > { %v541_v30 = vadd.f32 %v642_v28, %v540_v29  ;;  %v689_v31 = vpop.f32.mrb[3].mxu0 }
 0x2d3   : > { %544 = vst [vmem:[%s284_s15] sm:$0xff] %v541_v30 }
 0x2d4   : > { %805 = shalt.err (!%p802_p7)
}
 0x2d5   : > { %s806_s9 = scalar_lea.hbm %s1038_s21, 128  ;;  %s810_s16 = scalar_lea.hbm %s1087_s7, 512 }
 0x2d6   : > { %p807_p8 = scmp.ne.s32.totalorder %s1038_s21, %s806_s9  ;;  %p811_p1 = scmp.lt.u32.totalorder %s1038_s21, %s1087_s7 }
 0x2d7   : > { %p812_p0 = scmp.lt.u32.totalorder %s810_s16, %s806_s9  ;;  %p814_p6 = scmp.lt.u32.totalorder %s806_s9, %s1038_s21 }
 0x2d8   : > { %p808_p11 = pnand %p807_p8, %p1098_p9 }
 0x2d9   : > { %p813_p5 = por %p812_p0, %p811_p1 }
 0x2da   : > { %p809_p13 = pneg %p808_p11 }
 0x2db   : > { %p815_p10 = por %p814_p6, %p813_p5 }
 0x2dd   : > { %p816_p12 = pnand %p815_p10, %p809_p13 }
 0x2df   : > { %819 = shalt.err (!%p816_p12)
}
 0x2e0   : > { %709 = dma.vmem_to_hbm [thread:$0]  (%p1098_p9), %s1040_s18, 128, %s1038_s21, %s546_s22  }
 0x2e1 PF: > { %p721_p2 = scmp.ge.s32.totalorder %s858_s27, 2  ;;  %s571_s19 = sand.u32 1, %s846_s24  }
 0x2e2   : > { %p1099_p3 = scmp.ne.s32.totalorder %s1092_s12, 0  ;;  %s572_s20 = scalar_lea.sflag [#allocation4], %s571_s19 }
 0x2e4   : > { %p716_p4 = pnand %p721_p2, %p1099_p3 }
 0x2e6   : > { %841 = dma.done.wait (!%p716_p4), %s572_s20, 128  }
 0x2e7   : > { %843 = vsyncadd (!%p716_p4), %s572_s20, 4294967168  ;;  %p18_p7 = scmp.ge.s32.totalorder %s932_s30, 6   ;;  %s1100_s24 = smov %s850_s25 }
 0x2e8   : > { %s1101_s25 = smov %s854_s26  ;;  %s1102_s26 = smov %s943_s10 }
 0x2e9   : > { %s1103_s27 = smov %s932_s30  ;;  %20 = sbr.rel (!%p18_p7) target bundleno = 4 (0x4), region = 88 }
 0x2f0   :  { %577 = vsyncpa [#allocation3], 1 }
 0x2f1   :  { %579 = vsyncpa [#allocation3 + $0x1], 1 }
 0x2f2   :  { %580 = vsyncpa [#allocation4], 1 }
 0x2f3   :  { %582 = vsyncpa [#allocation4 + $0x1], 1 }

</bundles_post_ra>
